<compile_context>
chip_gen: v5e
topology: v5e:2x2
jax: 0.10.0
libtpu: 0.0.40
codegen_flags: <defaults>
</compile_context>

<pallas_src>
import functools
import math

import jax
import jax.numpy as jnp
from jax.experimental import pallas as pl
from jax.experimental.pallas import tpu as pltpu


def _static_expansion_kernel(
    x_ref, q_ref, bias_ref, mask_ref, wf_ref, bf_ref, out_ref,
    *, group_sizes, eps, approx_recip, matmul_dtype):
  cdt = matmul_dtype
  n_groups = len(group_sizes)

  x = x_ref[...].astype(jnp.float32)                   # (Bt, L, D)
  Bt, L, D = x.shape

  def recip(v):
    return pl.reciprocal(v, approx=approx_recip)

  # ---- fused per-token projections: [key | class_a | class_b | selector] ----
  x2d = x.reshape(Bt * L, D)
  proj = (jnp.dot(x2d.astype(cdt), wf_ref[...].astype(cdt),
                  preferred_element_type=jnp.float32)
          + bf_ref[...].astype(jnp.float32))           # (Bt*L, 4D) f32

  inv_sqrt_d = 1.0 / math.sqrt(D)
  # 1/sqrt(d_model) folded into x_key instead of scaling the (E, L) scores.
  x_key = (proj[:, 0 * D:1 * D] * inv_sqrt_d).reshape(Bt, L, D)
  a_embed = proj[:, 1 * D:2 * D].reshape(Bt, L, D)
  b_embed = proj[:, 2 * D:3 * D].reshape(Bt, L, D)
  selector = jax.nn.sigmoid(proj[:, 3 * D:4 * D]).reshape(Bt, L, D)

  # ---- expansion scores ----
  q_exp = q_ref[...].astype(cdt)                       # (Bt, E, D)
  xk = x_key.astype(cdt)
  z = jnp.einsum('bed,bld->bel', q_exp, xk,
                 preferred_element_type=jnp.float32)   # (Bt, E, L)
  # TODO(synk): all Dropout layers are identity here (inference / eval mode).

  # ---- forward pass: mask + row-normalize over keys (L) ----
  keep = (mask_ref[...] != 0).astype(jnp.float32)      # (Bt, E, L), 0/1
  zm = z * keep                                        # single masking multiply
  a_fw = jnp.maximum(zm, 0.0)
  b_fw = jnp.maximum(-zm, 0.0)
  a_fw = a_fw * recip(jnp.sum(a_fw, axis=-1, keepdims=True) + eps)
  b_fw = b_fw * recip(jnp.sum(b_fw, axis=-1, keepdims=True) + eps)

  bias_exp = bias_ref[...].astype(jnp.float32)         # (Bt, E, D)
  class_a = jnp.einsum('bel,bld->bed', a_fw.astype(cdt), a_embed.astype(cdt),
                       preferred_element_type=jnp.float32) + bias_exp
  class_b = jnp.einsum('bel,bld->bed', b_fw.astype(cdt), b_embed.astype(cdt),
                       preferred_element_type=jnp.float32) + bias_exp

  # ---- backward pass: per-group normalization over expansion slots ----
  # z^T produced directly via a second NT einsum (MXU) instead of an XLU
  # transpose of the (E, L) score tile; hidden under the memory roofline.
  zt = jnp.einsum('bld,bed->ble', xk, q_exp,
                  preferred_element_type=jnp.float32)  # (Bt, L, E)
  a_bw = jnp.maximum(zt, 0.0)                          # no mask on backward
  b_bw = jnp.maximum(-zt, 0.0)

  parts_a, parts_b = [], []
  start = 0
  for g in group_sizes:                                # static python loop
    pa = a_bw[:, :, start:start + g]
    pb = b_bw[:, :, start:start + g]
    sa = jnp.sum(pa, axis=-1, keepdims=True)
    sb = jnp.sum(pb, axis=-1, keepdims=True)
    # 1/len(num_enc_exp_list) folded into the reciprocal.
    parts_a.append(pa * recip(float(n_groups) * (sa + eps)))
    parts_b.append(pb * recip(float(n_groups) * (sb + eps)))
    start += g
  w_a = jnp.concatenate(parts_a, axis=-1) if n_groups > 1 else parts_a[0]
  w_b = jnp.concatenate(parts_b, axis=-1) if n_groups > 1 else parts_b[0]

  out_a = jnp.einsum('ble,bed->bld', w_a.astype(cdt), class_a.astype(cdt),
                     preferred_element_type=jnp.float32)  # (Bt, L, D)
  out_b = jnp.einsum('ble,bed->bld', w_b.astype(cdt), class_b.astype(cdt),
                     preferred_element_type=jnp.float32)

  # TODO(synk): for production d_model that is not a multiple of 128, pad D so
  # the output store is lane-dense (avoids masked vst partial stores).
  out_ref[...] = (out_b + selector * (out_a - out_b)).astype(out_ref.dtype)


def static_expansion_block(x, n_indexes, mask, params, *,
                           num_enc_exp_list, eps,
                           block_bs=None,
                           matmul_dtype=jnp.float32,
                           io_dtype=None,
                           approx_recip=True,
                           vmem_limit_bytes=32 * 1024 * 1024,
                           interpret=False):
  """Pallas forward of StaticExpansionBlock (dropout = identity).

  params = (query_table, bias_table, wk, bk, wa, ba, wb, bb, ws, bsel)
  io_dtype: optional dtype for the large streamed tensors (x, gathered query /
            bias rows).  Pass jnp.bfloat16 together with matmul_dtype=bf16 to
            halve HBM traffic on the memory-bound path; default keeps f32.
  """
  (query_table, bias_table, wk, bk, wa, ba, wb, bb, ws, bsel) = params
  bs, L, D = x.shape
  E = sum(num_enc_exp_list)
  assert n_indexes.shape == (bs, E)
  assert mask.shape == (bs, E, L)

  out_dtype = x.dtype

  # Plain-JAX glue: embedding gathers + fusion of the four projections.
  q_emb = query_table[n_indexes]                       # (bs, E, D)
  b_emb = bias_table[n_indexes]                        # (bs, E, D)
  w_fused = jnp.concatenate([wk, wa, wb, ws], axis=1)  # (D, 4D)
  b_fused = jnp.concatenate([bk, ba, bb, bsel], axis=1)  # (1, 4D)
  mask_i8 = mask.astype(jnp.int8)

  if io_dtype is not None:
    x = x.astype(io_dtype)
    q_emb = q_emb.astype(io_dtype)
    b_emb = b_emb.astype(io_dtype)

  if block_bs is None:
    block_bs = min(bs, 8)
  assert bs % block_bs == 0, "batch must be divisible by block_bs"
  grid = (bs // block_bs,)

  kernel = functools.partial(
      _static_expansion_kernel,
      group_sizes=tuple(int(g) for g in num_enc_exp_list),
      eps=float(eps),
      approx_recip=approx_recip,
      matmul_dtype=matmul_dtype)

  per_batch = lambda shape: pl.BlockSpec(shape, lambda b: (b, 0, 0))
  shared = lambda shape: pl.BlockSpec(shape, lambda b: (0, 0))

  return pl.pallas_call(
      kernel,
      out_shape=jax.ShapeDtypeStruct((bs, L, D), out_dtype),
      grid=grid,
      in_specs=[
          per_batch((block_bs, L, D)),     # x
          per_batch((block_bs, E, D)),     # query_exp rows
          per_batch((block_bs, E, D)),     # bias_exp rows
          per_batch((block_bs, E, L)),     # mask (int8)
          shared((D, 4 * D)),              # fused projection weight (resident)
          shared((1, 4 * D)),              # fused projection bias (resident)
      ],
      out_specs=per_batch((block_bs, L, D)),
      compiler_params=pltpu.CompilerParams(
          dimension_semantics=("parallel",),
          vmem_limit_bytes=vmem_limit_bytes),
      interpret=interpret,
  )(x, q_emb, b_emb, mask_i8, w_fused, b_fused)


def _reference(x, n_indexes, mask, params, *, num_enc_exp_list, eps):
  """Pure-JAX mirror of the PyTorch forward (dropout = identity)."""
  (query_table, bias_table, wk, bk, wa, ba, wb, bb, ws, bsel) = params
  bs, L, D = x.shape
  lin = lambda v, w, b: v @ w + b
  query_exp = query_table[n_indexes]
  bias_exp = bias_table[n_indexes]
  x_key = lin(x, wk, bk)
  z = jnp.einsum('bed,bld->bel', query_exp, x_key) / (D ** 0.5)
  a_fw = jnp.where(mask == 0, 0.0, jax.nn.relu(z))
  b_fw = jnp.where(mask == 0, 0.0, jax.nn.relu(-z))
  a_fw = a_fw / (a_fw.sum(-1, keepdims=True) + eps)
  b_fw = b_fw / (b_fw.sum(-1, keepdims=True) + eps)
  class_a = jnp.einsum('bel,bld->bed', a_fw, lin(x, wa, ba)) + bias_exp
  class_b = jnp.einsum('bel,bld->bed', b_fw, lin(x, wb, bb)) + bias_exp
  zt = jnp.swapaxes(z, 1, 2)
  a_bw = jax.nn.relu(zt)
  b_bw = jax.nn.relu(-zt)
  a_parts, b_parts = [], []
  acc = 0
  for g in num_enc_exp_list:
    sa = a_bw[:, :, acc:acc + g]
    sb = b_bw[:, :, acc:acc + g]
    acc += g
    a_parts.append(sa / (sa.sum(-1, keepdims=True) + eps))
    b_parts.append(sb / (sb.sum(-1, keepdims=True) + eps))
  a_bw = jnp.concatenate(a_parts, -1)
  b_bw = jnp.concatenate(b_parts, -1)
  ng = len(num_enc_exp_list)
  class_a = jnp.einsum('ble,bed->bld', a_bw, class_a) / ng
  class_b = jnp.einsum('ble,bed->bld', b_bw, class_b) / ng
  selector = jax.nn.sigmoid(lin(x, ws, bsel))
  return selector * class_a + (1.0 - selector) * class_b


if __name__ == "__main__":
  d_model = 32
  enc_len = 8
  num_enc_exp_list = [8, 8]
  bsz = 4
  eps = 1e-9
  E = sum(num_enc_exp_list)

  key = jax.random.PRNGKey(0)
  keys = jax.random.split(key, 16)

  x = jax.random.normal(keys[0], (bsz, enc_len, d_model), dtype=jnp.float32)
  n_indexes = jnp.tile(jnp.arange(E, dtype=jnp.int32), (bsz, 1))
  mask = jax.random.bernoulli(
      keys[1], 0.75, (bsz, E, enc_len)).astype(jnp.int8)

  query_table = jax.random.normal(keys[2], (E, d_model), jnp.float32) * 0.1
  bias_table = jax.random.normal(keys[3], (E, d_model), jnp.float32) * 0.1

  def make_linear(kw, kb):
    w = jax.random.normal(kw, (d_model, d_model), jnp.float32) / math.sqrt(d_model)
    b = jax.random.normal(kb, (1, d_model), jnp.float32) * 0.01
    return w, b

  wk, bk = make_linear(keys[4], keys[5])
  wa, ba = make_linear(keys[6], keys[7])
  wb, bb = make_linear(keys[8], keys[9])
  ws, bsel = make_linear(keys[10], keys[11])
  params = (query_table, bias_table, wk, bk, wa, ba, wb, bb, ws, bsel)

  ref = _reference(x, n_indexes, mask, params,
                   num_enc_exp_list=num_enc_exp_list, eps=eps)

  # Exact-math path (f32 IO, f32 matmuls, exact reciprocal): tight check.
  out = static_expansion_block(
      x, n_indexes, mask, params,
      num_enc_exp_list=num_enc_exp_list, eps=eps,
      block_bs=2, matmul_dtype=jnp.float32, io_dtype=None,
      approx_recip=False)
  out = jax.block_until_ready(out)
  assert out.shape == (bsz, enc_len, d_model)
  max_err = float(jnp.max(jnp.abs(out - ref)))
  assert jnp.allclose(out, ref, atol=1e-4, rtol=1e-4), max_err

  # Fast path (bf16 streamed IO + bf16 MXU operands + EUP approx reciprocal):
  # loose check.
  out_fast = static_expansion_block(
      x, n_indexes, mask, params,
      num_enc_exp_list=num_enc_exp_list, eps=eps,
      block_bs=2, matmul_dtype=jnp.bfloat16, io_dtype=jnp.bfloat16,
      approx_recip=True)
  out_fast = jax.block_until_ready(out_fast)
  assert out_fast.shape == (bsz, enc_len, d_model)
  assert bool(jnp.all(jnp.isfinite(out_fast)))
  assert jnp.allclose(out_fast, ref, atol=1e-1, rtol=1e-1)

  print("KERNEL_OK")
</pallas_src>

<mosaic_0001>
module attributes {stable_mosaic.version = 11 : i64} {
  func.func @_static_expansion_kernel(%arg0: i32, %arg1: memref<2x8x32xf32, #tpu.memory_space<vmem>>, %arg2: memref<2x16x32xf32, #tpu.memory_space<vmem>>, %arg3: memref<2x16x32xf32, #tpu.memory_space<vmem>>, %arg4: memref<2x16x8xi8, #tpu.memory_space<vmem>>, %arg5: memref<32x128xf32, #tpu.memory_space<vmem>>, %arg6: memref<1x128xf32, #tpu.memory_space<vmem>>, %arg7: memref<2x8x32xf32, #tpu.memory_space<vmem>>) attributes {dimension_semantics = [#tpu.dimension_semantics<parallel>], iteration_bounds = array<i64: 2>, scalar_prefetch = 0 : i64, scratch_operands = 0 : i64, tpu.core_type = #tpu.core_type<tc>, window_params = [{transform_indices = @transform_0, window_bounds = array<i64: 2, 8, 32>}, {transform_indices = @transform_1, window_bounds = array<i64: 2, 16, 32>}, {transform_indices = @transform_2, window_bounds = array<i64: 2, 16, 32>}, {transform_indices = @transform_3, window_bounds = array<i64: 2, 16, 8>}, {pipeline_mode = #tpu.pipeline_mode<synchronous>, transform_indices = @transform_4, window_bounds = array<i64: 32, 128>}, {pipeline_mode = #tpu.pipeline_mode<synchronous>, transform_indices = @transform_5, window_bounds = array<i64: 1, 128>}, {transform_indices = @transform_6, window_bounds = array<i64: 2, 8, 32>}]} {
    %c0 = arith.constant 0 : index
    %c0_0 = arith.constant 0 : index
    %c0_1 = arith.constant 0 : index
    %0 = vector.load %arg1[%c0, %c0_0, %c0_1] : memref<2x8x32xf32, #tpu.memory_space<vmem>>, vector<2x8x32xf32>
    %1 = vector.shape_cast %0 : vector<2x8x32xf32> to vector<16x32xf32>
    %c0_2 = arith.constant 0 : index
    %c0_3 = arith.constant 0 : index
    %2 = vector.load %arg5[%c0_2, %c0_3] : memref<32x128xf32, #tpu.memory_space<vmem>>, vector<32x128xf32>
    %cst = arith.constant dense<0.000000e+00> : vector<16x128xf32>
    %3 = tpu.matmul %1, %2, %cst {dimension_numbers = #tpu.dot_dimension_numbers<[1], [0], [0], [1], [0, 0, 1, 1], [], []>} : vector<16x32xf32>, vector<32x128xf32>, vector<16x128xf32> -> vector<16x128xf32>
    %c0_4 = arith.constant 0 : index
    %c0_5 = arith.constant 0 : index
    %4 = vector.load %arg6[%c0_4, %c0_5] : memref<1x128xf32, #tpu.memory_space<vmem>>, vector<1x128xf32>
    %5 = vector.broadcast %4 : vector<1x128xf32> to vector<16x128xf32>
    %6 = arith.addf %3, %5 : vector<16x128xf32>
    %7 = vector.extract_strided_slice %6 {offsets = [0, 0], sizes = [16, 32], strides = [1, 1]} : vector<16x128xf32> to vector<16x32xf32>
    %cst_6 = arith.constant 0.176776692 : f32
    %8 = vector.broadcast %cst_6 : f32 to vector<16x32xf32>
    %9 = arith.mulf %7, %8 : vector<16x32xf32>
    %10 = vector.shape_cast %9 : vector<16x32xf32> to vector<2x8x32xf32>
    %11 = vector.extract_strided_slice %6 {offsets = [0, 32], sizes = [16, 32], strides = [1, 1]} : vector<16x128xf32> to vector<16x32xf32>
    %12 = vector.shape_cast %11 : vector<16x32xf32> to vector<2x8x32xf32>
    %13 = vector.extract_strided_slice %6 {offsets = [0, 64], sizes = [16, 32], strides = [1, 1]} : vector<16x128xf32> to vector<16x32xf32>
    %14 = vector.shape_cast %13 : vector<16x32xf32> to vector<2x8x32xf32>
    %15 = vector.extract_strided_slice %6 {offsets = [0, 96], sizes = [16, 32], strides = [1, 1]} : vector<16x128xf32> to vector<16x32xf32>
    %16 = arith.negf %15 : vector<16x32xf32>
    %17 = math.exp %16 : vector<16x32xf32>
    %cst_7 = arith.constant 1.000000e+00 : f32
    %18 = vector.broadcast %cst_7 : f32 to vector<16x32xf32>
    %19 = arith.addf %18, %17 : vector<16x32xf32>
    %20 = arith.divf %18, %19 : vector<16x32xf32>
    %21 = vector.shape_cast %20 : vector<16x32xf32> to vector<2x8x32xf32>
    %c0_8 = arith.constant 0 : index
    %c0_9 = arith.constant 0 : index
    %c0_10 = arith.constant 0 : index
    %22 = vector.load %arg2[%c0_8, %c0_9, %c0_10] : memref<2x16x32xf32, #tpu.memory_space<vmem>>, vector<2x16x32xf32>
    "tpu.trace_start"() <{level = 10 : i32, message = "bed,bld->bel"}> : () -> ()
    %cst_11 = arith.constant dense<0.000000e+00> : vector<2x16x8xf32>
    %23 = tpu.matmul %22, %10, %cst_11 {dimension_numbers = #tpu.dot_dimension_numbers<[2], [2], [1], [1], [0, 0, 0, 1, 1, 1], [0], [0]>} : vector<2x16x32xf32>, vector<2x8x32xf32>, vector<2x16x8xf32> -> vector<2x16x8xf32>
    "tpu.trace_stop"() : () -> ()
    %c0_12 = arith.constant 0 : index
    %c0_13 = arith.constant 0 : index
    %c0_14 = arith.constant 0 : index
    %24 = vector.load %arg4[%c0_12, %c0_13, %c0_14] : memref<2x16x8xi8, #tpu.memory_space<vmem>>, vector<2x16x8xi8>
    %c0_i8 = arith.constant 0 : i8
    %25 = vector.broadcast %c0_i8 : i8 to vector<2x16x8xi8>
    %26 = arith.cmpi ne, %24, %25 : vector<2x16x8xi8>
    %27 = arith.extui %26 : vector<2x16x8xi1> to vector<2x16x8xi32>
    %28 = arith.sitofp %27 : vector<2x16x8xi32> to vector<2x16x8xf32>
    %29 = arith.mulf %23, %28 : vector<2x16x8xf32>
    %cst_15 = arith.constant 0.000000e+00 : f32
    %30 = vector.broadcast %cst_15 : f32 to vector<2x16x8xf32>
    %31 = arith.maximumf %29, %30 : vector<2x16x8xf32>
    %cst_16 = arith.constant 0.000000e+00 : f32
    %32 = vector.broadcast %cst_16 : f32 to vector<2x16x8xf32>
    %33 = arith.subf %32, %29 : vector<2x16x8xf32>
    %cst_17 = arith.constant 0.000000e+00 : f32
    %34 = vector.broadcast %cst_17 : f32 to vector<2x16x8xf32>
    %35 = arith.maximumf %33, %34 : vector<2x16x8xf32>
    %cst_18 = arith.constant dense<0.000000e+00> : vector<2x16xf32>
    %36 = vector.multi_reduction <add>, %31, %cst_18 [2] : vector<2x16x8xf32> to vector<2x16xf32>
    %37 = vector.shape_cast %36 : vector<2x16xf32> to vector<2x16x1xf32>
    %cst_19 = arith.constant 9.99999971E-10 : f32
    %38 = vector.broadcast %cst_19 : f32 to vector<2x16x1xf32>
    %39 = arith.addf %37, %38 : vector<2x16x1xf32>
    %40 = tpu.reciprocal %39 : vector<2x16x1xf32> -> vector<2x16x1xf32>
    %41 = vector.broadcast %40 : vector<2x16x1xf32> to vector<2x16x8xf32>
    %42 = arith.mulf %31, %41 : vector<2x16x8xf32>
    %cst_20 = arith.constant dense<0.000000e+00> : vector<2x16xf32>
    %43 = vector.multi_reduction <add>, %35, %cst_20 [2] : vector<2x16x8xf32> to vector<2x16xf32>
    %44 = vector.shape_cast %43 : vector<2x16xf32> to vector<2x16x1xf32>
    %cst_21 = arith.constant 9.99999971E-10 : f32
    %45 = vector.broadcast %cst_21 : f32 to vector<2x16x1xf32>
    %46 = arith.addf %44, %45 : vector<2x16x1xf32>
    %47 = tpu.reciprocal %46 : vector<2x16x1xf32> -> vector<2x16x1xf32>
    %48 = vector.broadcast %47 : vector<2x16x1xf32> to vector<2x16x8xf32>
    %49 = arith.mulf %35, %48 : vector<2x16x8xf32>
    %c0_22 = arith.constant 0 : index
    %c0_23 = arith.constant 0 : index
    %c0_24 = arith.constant 0 : index
    %50 = vector.load %arg3[%c0_22, %c0_23, %c0_24] : memref<2x16x32xf32, #tpu.memory_space<vmem>>, vector<2x16x32xf32>
    "tpu.trace_start"() <{level = 10 : i32, message = "bel,bld->bed"}> : () -> ()
    %cst_25 = arith.constant dense<0.000000e+00> : vector<2x16x32xf32>
    %51 = tpu.matmul %42, %12, %cst_25 {dimension_numbers = #tpu.dot_dimension_numbers<[2], [1], [1], [2], [0, 0, 0, 1, 1, 2], [0], [0]>} : vector<2x16x8xf32>, vector<2x8x32xf32>, vector<2x16x32xf32> -> vector<2x16x32xf32>
    "tpu.trace_stop"() : () -> ()
    %52 = arith.addf %51, %50 : vector<2x16x32xf32>
    "tpu.trace_start"() <{level = 10 : i32, message = "bel,bld->bed"}> : () -> ()
    %cst_26 = arith.constant dense<0.000000e+00> : vector<2x16x32xf32>
    %53 = tpu.matmul %49, %14, %cst_26 {dimension_numbers = #tpu.dot_dimension_numbers<[2], [1], [1], [2], [0, 0, 0, 1, 1, 2], [0], [0]>} : vector<2x16x8xf32>, vector<2x8x32xf32>, vector<2x16x32xf32> -> vector<2x16x32xf32>
    "tpu.trace_stop"() : () -> ()
    %54 = arith.addf %53, %50 : vector<2x16x32xf32>
    "tpu.trace_start"() <{level = 10 : i32, message = "bld,bed->ble"}> : () -> ()
    %cst_27 = arith.constant dense<0.000000e+00> : vector<2x8x16xf32>
    %55 = tpu.matmul %10, %22, %cst_27 {dimension_numbers = #tpu.dot_dimension_numbers<[2], [2], [1], [1], [0, 0, 0, 1, 1, 1], [0], [0]>} : vector<2x8x32xf32>, vector<2x16x32xf32>, vector<2x8x16xf32> -> vector<2x8x16xf32>
    "tpu.trace_stop"() : () -> ()
    %cst_28 = arith.constant 0.000000e+00 : f32
    %56 = vector.broadcast %cst_28 : f32 to vector<2x8x16xf32>
    %57 = arith.maximumf %55, %56 : vector<2x8x16xf32>
    %cst_29 = arith.constant 0.000000e+00 : f32
    %58 = vector.broadcast %cst_29 : f32 to vector<2x8x16xf32>
    %59 = arith.subf %58, %55 : vector<2x8x16xf32>
    %cst_30 = arith.constant 0.000000e+00 : f32
    %60 = vector.broadcast %cst_30 : f32 to vector<2x8x16xf32>
    %61 = arith.maximumf %59, %60 : vector<2x8x16xf32>
    %62 = vector.extract_strided_slice %57 {offsets = [0, 0, 0], sizes = [2, 8, 8], strides = [1, 1, 1]} : vector<2x8x16xf32> to vector<2x8x8xf32>
    %63 = vector.extract_strided_slice %61 {offsets = [0, 0, 0], sizes = [2, 8, 8], strides = [1, 1, 1]} : vector<2x8x16xf32> to vector<2x8x8xf32>
    %cst_31 = arith.constant dense<0.000000e+00> : vector<2x8xf32>
    %64 = vector.multi_reduction <add>, %62, %cst_31 [2] : vector<2x8x8xf32> to vector<2x8xf32>
    %65 = vector.shape_cast %64 : vector<2x8xf32> to vector<2x8x1xf32>
    %cst_32 = arith.constant dense<0.000000e+00> : vector<2x8xf32>
    %66 = vector.multi_reduction <add>, %63, %cst_32 [2] : vector<2x8x8xf32> to vector<2x8xf32>
    %67 = vector.shape_cast %66 : vector<2x8xf32> to vector<2x8x1xf32>
    %cst_33 = arith.constant 9.99999971E-10 : f32
    %68 = vector.broadcast %cst_33 : f32 to vector<2x8x1xf32>
    %69 = arith.addf %65, %68 : vector<2x8x1xf32>
    %cst_34 = arith.constant 2.000000e+00 : f32
    %70 = vector.broadcast %cst_34 : f32 to vector<2x8x1xf32>
    %71 = arith.mulf %70, %69 : vector<2x8x1xf32>
    %72 = tpu.reciprocal %71 : vector<2x8x1xf32> -> vector<2x8x1xf32>
    %73 = vector.broadcast %72 : vector<2x8x1xf32> to vector<2x8x8xf32>
    %74 = arith.mulf %62, %73 : vector<2x8x8xf32>
    %cst_35 = arith.constant 9.99999971E-10 : f32
    %75 = vector.broadcast %cst_35 : f32 to vector<2x8x1xf32>
    %76 = arith.addf %67, %75 : vector<2x8x1xf32>
    %cst_36 = arith.constant 2.000000e+00 : f32
    %77 = vector.broadcast %cst_36 : f32 to vector<2x8x1xf32>
    %78 = arith.mulf %77, %76 : vector<2x8x1xf32>
    %79 = tpu.reciprocal %78 : vector<2x8x1xf32> -> vector<2x8x1xf32>
    %80 = vector.broadcast %79 : vector<2x8x1xf32> to vector<2x8x8xf32>
    %81 = arith.mulf %63, %80 : vector<2x8x8xf32>
    %82 = vector.extract_strided_slice %57 {offsets = [0, 0, 8], sizes = [2, 8, 8], strides = [1, 1, 1]} : vector<2x8x16xf32> to vector<2x8x8xf32>
    %83 = vector.extract_strided_slice %61 {offsets = [0, 0, 8], sizes = [2, 8, 8], strides = [1, 1, 1]} : vector<2x8x16xf32> to vector<2x8x8xf32>
    %cst_37 = arith.constant dense<0.000000e+00> : vector<2x8xf32>
    %84 = vector.multi_reduction <add>, %82, %cst_37 [2] : vector<2x8x8xf32> to vector<2x8xf32>
    %85 = vector.shape_cast %84 : vector<2x8xf32> to vector<2x8x1xf32>
    %cst_38 = arith.constant dense<0.000000e+00> : vector<2x8xf32>
    %86 = vector.multi_reduction <add>, %83, %cst_38 [2] : vector<2x8x8xf32> to vector<2x8xf32>
    %87 = vector.shape_cast %86 : vector<2x8xf32> to vector<2x8x1xf32>
    %cst_39 = arith.constant 9.99999971E-10 : f32
    %88 = vector.broadcast %cst_39 : f32 to vector<2x8x1xf32>
    %89 = arith.addf %85, %88 : vector<2x8x1xf32>
    %cst_40 = arith.constant 2.000000e+00 : f32
    %90 = vector.broadcast %cst_40 : f32 to vector<2x8x1xf32>
    %91 = arith.mulf %90, %89 : vector<2x8x1xf32>
    %92 = tpu.reciprocal %91 : vector<2x8x1xf32> -> vector<2x8x1xf32>
    %93 = vector.broadcast %92 : vector<2x8x1xf32> to vector<2x8x8xf32>
    %94 = arith.mulf %82, %93 : vector<2x8x8xf32>
    %cst_41 = arith.constant 9.99999971E-10 : f32
    %95 = vector.broadcast %cst_41 : f32 to vector<2x8x1xf32>
    %96 = arith.addf %87, %95 : vector<2x8x1xf32>
    %cst_42 = arith.constant 2.000000e+00 : f32
    %97 = vector.broadcast %cst_42 : f32 to vector<2x8x1xf32>
    %98 = arith.mulf %97, %96 : vector<2x8x1xf32>
    %99 = tpu.reciprocal %98 : vector<2x8x1xf32> -> vector<2x8x1xf32>
    %100 = vector.broadcast %99 : vector<2x8x1xf32> to vector<2x8x8xf32>
    %101 = arith.mulf %83, %100 : vector<2x8x8xf32>
    %102 = tpu.concatenate %74, %94 in 2 : vector<2x8x8xf32>, vector<2x8x8xf32> -> vector<2x8x16xf32>
    %103 = tpu.concatenate %81, %101 in 2 : vector<2x8x8xf32>, vector<2x8x8xf32> -> vector<2x8x16xf32>
    "tpu.trace_start"() <{level = 10 : i32, message = "ble,bed->bld"}> : () -> ()
    %cst_43 = arith.constant dense<0.000000e+00> : vector<2x8x32xf32>
    %104 = tpu.matmul %102, %52, %cst_43 {dimension_numbers = #tpu.dot_dimension_numbers<[2], [1], [1], [2], [0, 0, 0, 1, 1, 2], [0], [0]>} : vector<2x8x16xf32>, vector<2x16x32xf32>, vector<2x8x32xf32> -> vector<2x8x32xf32>
    %cst_44 = arith.constant dense<0.000000e+00> : vector<2x8x32xf32>
    %105 = tpu.matmul %103, %54, %cst_44 {dimension_numbers = #tpu.dot_dimension_numbers<[2], [1], [1], [2], [0, 0, 0, 1, 1, 2], [0], [0]>} : vector<2x8x16xf32>, vector<2x16x32xf32>, vector<2x8x32xf32> -> vector<2x8x32xf32>
    "tpu.trace_stop"() : () -> ()
    %106 = arith.subf %104, %105 : vector<2x8x32xf32>
    %107 = arith.mulf %21, %106 : vector<2x8x32xf32>
    %108 = arith.addf %105, %107 : vector<2x8x32xf32>
    %c0_45 = arith.constant 0 : index
    %c0_46 = arith.constant 0 : index
    %c0_47 = arith.constant 0 : index
    %109 = vector.load %arg7[%c0_45, %c0_46, %c0_47] : memref<2x8x32xf32, #tpu.memory_space<vmem>>, vector<2x8x32xf32>
    tpu.vector_store %arg7[%c0_45, %c0_46, %c0_47], %108 {strides = array<i32>} : memref<2x8x32xf32, #tpu.memory_space<vmem>>, vector<2x8x32xf32>,
    return
  }
  func.func @transform_0(%arg0: i32) -> (i32, i32, i32) {
    %c0_i32 = arith.constant 0 : i32
    %c0_i32_0 = arith.constant 0 : i32
    %c0_i32_1 = arith.constant 0 : i32
    return %arg0, %c0_i32, %c0_i32_0 : i32, i32, i32
  }
  func.func @transform_1(%arg0: i32) -> (i32, i32, i32) {
    %c0_i32 = arith.constant 0 : i32
    %c0_i32_0 = arith.constant 0 : i32
    %c0_i32_1 = arith.constant 0 : i32
    return %arg0, %c0_i32, %c0_i32_0 : i32, i32, i32
  }
  func.func @transform_2(%arg0: i32) -> (i32, i32, i32) {
    %c0_i32 = arith.constant 0 : i32
    %c0_i32_0 = arith.constant 0 : i32
    %c0_i32_1 = arith.constant 0 : i32
    return %arg0, %c0_i32, %c0_i32_0 : i32, i32, i32
  }
  func.func @transform_3(%arg0: i32) -> (i32, i32, i32) {
    %c0_i32 = arith.constant 0 : i32
    %c0_i32_0 = arith.constant 0 : i32
    %c0_i32_1 = arith.constant 0 : i32
    return %arg0, %c0_i32, %c0_i32_0 : i32, i32, i32
  }
  func.func @transform_4(%arg0: i32) -> (i32, i32) {
    %c0_i32 = arith.constant 0 : i32
    %c0_i32_0 = arith.constant 0 : i32
    %c0_i32_1 = arith.constant 0 : i32
    return %c0_i32, %c0_i32_0 : i32, i32
  }
  func.func @transform_5(%arg0: i32) -> (i32, i32) {
    %c0_i32 = arith.constant 0 : i32
    %c0_i32_0 = arith.constant 0 : i32
    %c0_i32_1 = arith.constant 0 : i32
    return %c0_i32, %c0_i32_0 : i32, i32
  }
  func.func @transform_6(%arg0: i32) -> (i32, i32, i32) {
    %c0_i32 = arith.constant 0 : i32
    %c0_i32_0 = arith.constant 0 : i32
    %c0_i32_1 = arith.constant 0 : i32
    return %arg0, %c0_i32, %c0_i32_0 : i32, i32, i32
  }
}

</mosaic_0001>

<bundles_post_ra>
// kernel: tpu_custom_call.1
= control target key start
LH: loop header
LB: loop body
LE: loop exit
PB: predicated region body
PF: predicated region fallthrough
CT: control target
= control target key end

     0   :  { %s2441_s0 = inlined_call_operand.hbm [shape: f32[4,8,32], index: 0, kind: input, shape index: {}]   ;;  %s2442_s1 = inlined_call_operand.hbm [shape: f32[4,16,32], index: 1, kind: input, shape index: {}]   ;;  %s2443_s2 = inlined_call_operand.hbm [shape: f32[4,16,32], index: 2, kind: input, shape index: {}]   ;;  %s2444_s3 = inlined_call_operand.vmem [shape: s8[4,16,8], index: 3, kind: input, shape index: {}]   ;;  %s2445_s4 = inlined_call_operand.hbm [shape: f32[32,128], index: 4, kind: input, shape index: {}]   ;;  %s2446_s5 = inlined_call_operand.vmem [shape: f32[1,128], index: 5, kind: input, shape index: {}]   ;;  %s2447_s6 = inlined_call_operand.hbm [shape: f32[4,8,32], index: 6, kind: output, shape index: {}]  }
   0x1   :  { %2458 = sst [smem:[#allocation20_spill]] %s2442_s1 }
   0x2   :  { %2459 = sst [smem:[#allocation21_spill]] %s2445_s4 }
   0x3   :  { %11 = vsyncpa [#allocation3], 0 }
   0x4   :  { %13 = vsyncpa [#allocation3 + $0x1], 0 }
   0x5   :  { %14 = vsyncpa [#allocation6], 0 }
   0x6   :  { %16 = vsyncpa [#allocation6 + $0x1], 0 }
   0x7   :  { %17 = vsyncpa [#allocation9], 0 }
   0x8   :  { %18 = vsyncpa [#allocation4], 0 }
   0x9   :  { %20 = vsyncpa [#allocation4 + $0x1], 0  ;;  %s1812_s21 = smov 0   ;;  %s1814_s22 = smov 0  }
   0xa   :  { %s1816_s23 = smov 0   ;;  %s1818_s24 = smov 0  }
   0xb LB: > { %2460 = sst [smem:[#allocation15_spill]] %s1752_s21  ;;  %s1833_s25 = sadd.s32 1, %s1764_s24   ;;  %s1764_s24 = sphi %s1818_s24, %s2509_s24   ;;  %s1760_s23 = sphi %s1816_s23, %s2511_s23   ;;  %s1756_s22 = sphi %s1814_s22, %s2513_s22   ;;  %s1752_s21 = sphi %s1812_s21, %s2512_s21  }
   0xc   : > { %2461 = sst [smem:[#allocation16_spill]] %s1760_s23  ;;  %s33_s26 = sadd.s32 1, %s1760_s23 }
   0xd   : > { %2462 = sst [smem:[#allocation17_spill]] %s1833_s25  ;;  %s30_s27 = ssub.s32 %s1764_s24, %s1833_s25 }
   0xe   : > { %p40_p0 = scmp.ne.s32.totalorder %s1760_s23, %s1756_s22  ;;  %p31_p1 = scmp.eq.s32.totalorder %s30_s27, 0 }
   0xf   : > { %p41_p2 = scmp.eq.s32.totalorder %s1764_s24, 0  ;;  %p1478_p5 = scmp.lt.s32.totalorder %s1764_s24, 2 }
  0x10   : > { %s1842_s28 = scalar_select %p31_p1, %s1760_s23, %s33_s26  }
  0x11   : > { %p42_p3 = por %p41_p2, %p40_p0  ;;  %s1850_s29 = sand.u32 1, %s1760_s23  }
  0x12   : > { %2463 = sst [smem:[#allocation18_spill]] %s1842_s28  ;;  %s255_s30 = sand.u32 1, %s1764_s24  }
  0x13   : > { %s1386_s7 = sshll.u32 %s1850_s29, 5  ;;  %p1854_p6 = pnand %p1478_p5, %p42_p3 }
  0x14   : > { %s1442_s9 = sshll.u32 %s1764_s24, 5  ;;  %s2465_s1 = sld [smem:[#allocation20_spill]] }
  0x15   : > { %s259_s14 = scalar_lea.vmem [#allocation5], %s1386_s7  ;;  %s1864_s16 = scalar_lea.sflag [#allocation6], %s255_s30 }
  0x16   : > { %s268_s15 = sshll.u32 %s259_s14, 4  ;;  %p1574_p8 = pneg %p1854_p6  ;;  %s269_s15 = int_to_ptr.vmem [resolvable:$true] %s268_s15 }
  0x1a   : > { %s265_s12 = scalar_lea.hbm %s2465_s1, %s1442_s9  ;;  %s1577_s26 = scalar_lea.hbm %s2465_s1, 64 }
  0x1b   : > { %s266_s13 = sshll.u32 %s265_s12, 4  ;;  %s267_s13 = int_to_ptr.hbm [resolvable:$true] %s266_s13 }
  0x1c   : > { %s1570_s17 = sshra.s32 %s267_s13, 4  ;;  %s1571_s17 = int_to_ptr.hbm [resolvable:$true] %s1570_s17 }
  0x1d   : > { %s1572_s18 = scalar_lea.hbm %s1571_s17, 32  ;;  %p1578_p11 = scmp.lt.s32.totalorder %s1571_s17, %s2465_s1 }
  0x1e   : > { %p1573_p7 = scmp.ne.s32.totalorder %s1571_s17, %s1572_s18  ;;  %p1579_p12 = scmp.lt.s32.totalorder %s1577_s26, %s1572_s18 }
  0x20   : > { %p1575_p9 = pnand %p1574_p8, %p1573_p7  ;;  %p1580_p13 = por %p1579_p12, %p1578_p11 }
  0x22   : > { %p1576_p10 = pneg %p1575_p9 }
  0x24   : > { %p1581_p1 = pnand %p1580_p13, %p1576_p10 }
  0x26   : > { %1584 = shalt.err (!%p1581_p1)
}
  0x27   : > { %s2448_s30 = smov 128   ;;  %s2450_s11 = smov 8  }
  0x28   : > { %1469 = dma.hbm_to_vmem [thread:$0]  (!%p1854_p6), %s267_s13, 512, %s269_s15, %s1864_s16, %s2448_s30, %s2448_s30, %s2450_s11  }
  0x29   : > { %s288_s17 = scalar_lea.hbm %s2443_s2, %s1442_s9  ;;  %s282_s19 = scalar_lea.vmem [#allocation7], %s1386_s7 }
  0x2a   : > { %s289_s18 = sshll.u32 %s288_s17, 4  ;;  %s291_s20 = sshll.u32 %s282_s19, 4  ;;  %s1888_s18 = int_to_ptr.hbm [resolvable:$true] %s289_s18  ;;  %s1890_s20 = int_to_ptr.vmem [resolvable:$true] %s291_s20 }
  0x2b   : > { %s1893_s26 = sadd.s32 4294967295, %s1764_s24   ;;  %s1379_s27 = sadd.s32 4294967294, %s1764_s24  }
  0x2c   : > { %p46_p2 = scmp.ne.s32.totalorder %s1756_s22, %s1752_s21  ;;  %p2457_p3 = scmp.eq.s32.totalorder %s1893_s26, 0 }
  0x2d   : > { %p190_p5 = scmp.eq.s32.totalorder %s1893_s26, 1  ;;  %p196_p7 = scmp.eq.s32.totalorder %s1379_s27, 1 }
  0x2e   : > { %p1902_p9 = por %p2457_p3, %p46_p2  ;;  %p1380_p10 = scmp.ge.s32.totalorder %s1764_s24, 1 }
  0x2f   : > { %p1910_p11 = por %p190_p5, %p40_p0  ;;  %p1914_p12 = por %p196_p7, %p46_p2 }
  0x30   : > { %p203_p13 = scmp.lt.s32.totalorder %s1764_s24, 3  ;;  %s2470_s4 = sld [smem:[#allocation21_spill]] }
  0x31   : > { %s2468_s13 = scalar_select %p1914_p12, 1, 0 }
  0x32   : > { %p1922_p1 = pnand %p1380_p10, %p203_p13  ;;  %s1768_s17 = smov [#allocation8]  }
  0x33   : > { %2469 = sst [smem:[#allocation19_spill]] %s2468_s13  ;;  %s216_s19 = sshll.u32 %s1768_s17, 4  ;;  %s217_s19 = int_to_ptr.vmem [resolvable:$true] %s216_s19 }
  0x34   : > { %p1459_p0 = pneg %p1922_p1  ;;  %s1383_s27 = sshll.u32 %s1850_s29, 4 }
  0x35   : > { %s1440_s30 = sshll.u32 %s1764_s24, 4  ;;  %s237_s1 = scalar_lea.vmem [#allocation2], %s1383_s27 }
  0x36   : > { %s214_s12 = sshll.u32 %s2470_s4, 4  ;;  %p1460_p2 = pnand %p1459_p0, %p2457_p3  ;;  %s215_s12 = int_to_ptr.hbm [resolvable:$true] %s214_s12 }
  0x37   : > { %s242_s10 = scalar_lea.hbm %s2441_s0, %s1440_s30  ;;  %s245_s4 = sshll.u32 %s237_s1, 4  ;;  %s246_s4 = int_to_ptr.vmem [resolvable:$true] %s245_s4 }
  0x38   : > { %s243_s28 = sshll.u32 %s242_s10, 4  ;;  %s2472_s23 = smov 8   ;;  %s244_s28 = int_to_ptr.hbm [resolvable:$true] %s243_s28 }
  0x39   : > { %s2473_s25 = smov 128   ;;  %s234_s17 = scalar_lea.sflag [#allocation3], %s1850_s29 }
  0x3a   : > { %1462 = dma.hbm_to_vmem [thread:$0]  (!%p1460_p2), %s215_s12, 512, %s217_s19, [#allocation9], %s2473_s25, %s2473_s25, %s2472_s23  }
  0x3b   : > { %s1630_s13 = sshra.s32 %s244_s28, 4  ;;  %s1637_s1 = scalar_lea.hbm %s2441_s0, 32  ;;  %s1631_s13 = int_to_ptr.hbm [resolvable:$true] %s1630_s13 }
  0x3c   : > { %s1632_s21 = scalar_lea.hbm %s1631_s13, 16  ;;  %p1638_p13 = scmp.lt.s32.totalorder %s1631_s13, %s2441_s0 }
  0x3d   : > { %p1633_p5 = scmp.ne.s32.totalorder %s1631_s13, %s1632_s21  ;;  %p1639_p0 = scmp.lt.s32.totalorder %s1637_s1, %s1632_s21 }
  0x3f   : > { %p1635_p7 = pnand %p1633_p5, %p1574_p8  ;;  %p1640_p2 = por %p1639_p0, %p1638_p13 }
  0x41   : > { %p1636_p10 = pneg %p1635_p7 }
  0x43   : > { %p1641_p4 = pnand %p1640_p2, %p1636_p10 }
  0x45   : > { %1644 = shalt.err (!%p1641_p4)
}
  0x46   : > { %1466 = dma.hbm_to_vmem [thread:$0]  (!%p1854_p6), %s244_s28, 256, %s246_s4, %s234_s17, %s2473_s25, %s2473_s25, %s2472_s23  }
  0x47   : > { %s1660_s29 = sshra.s32 %s1888_s18, 4  ;;  %s1667_s19 = scalar_lea.hbm %s2443_s2, 64  ;;  %s1661_s29 = int_to_ptr.hbm [resolvable:$true] %s1660_s29 }
  0x48   : > { %s1662_s12 = scalar_lea.hbm %s1661_s29, 32  ;;  %p1668_p4 = scmp.lt.s32.totalorder %s1661_s29, %s2443_s2 }
  0x49   : > { %p1663_p5 = scmp.ne.s32.totalorder %s1661_s29, %s1662_s12  ;;  %p1669_p10 = scmp.lt.s32.totalorder %s1667_s19, %s1662_s12 }
  0x4b   : > { %p1665_p7 = pnand %p1663_p5, %p1574_p8  ;;  %p1670_p13 = por %p1669_p10, %p1668_p4 }
  0x4d   : > { %p1666_p3 = pneg %p1665_p7 }
  0x4f   : > { %p1671_p0 = pnand %p1670_p13, %p1666_p3 }
  0x51   : > { %1674 = shalt.err (!%p1671_p0)
}
  0x52   : > { %1472 = dma.hbm_to_vmem [thread:$0]  (!%p1854_p6), %s1888_s18, 512, %s1890_s20, %s1864_s16, %s2473_s25, %s2473_s25, %s2472_s23  }
  0x53   : > { %313 = sbr.rel (%p1922_p1) target bundleno = 1046 (0x416), region = 44  ;;  %s1974_s4 = sand.u32 (!%p1922_p1), 1, %s1756_s22  }
  0x54   : > { %s1395_s28 = sshll.u32 (!%p1922_p1), %s1974_s4, 4  ;;  %s316_s17 = scalar_lea.sflag (!%p1922_p1), [#allocation3], %s1974_s4 }
  0x55   : > { %s319_s8 = scalar_lea.vmem (!%p1922_p1), [#allocation2], %s1395_s28 }
  0x58   : > { %1735 = dma.done.wait (%p1902_p9), %s316_s17, 256  }
  0x59   : > { %1737 = vsyncadd (%p1902_p9), %s316_s17, 4294967040  ;;  %s325_s23 = sand.u32 1, %s1893_s26   ;;  %s1396_s25 = sshll.u32 %s1974_s4, 5 }
  0x5a   : > { %s326_s16 = scalar_lea.sflag [#allocation6], %s325_s23  ;;  %s329_s18 = scalar_lea.vmem [#allocation5], %s1396_s25 }
  0x5b   : > { %1739 = dma.done.wait (%p1902_p9), %s326_s16, 1024  }
  0x5c   : > { %1741 = vsyncadd (%p1902_p9), %s326_s16, 4294966272  ;;  %s1990_s20 = scalar_lea.vmem [#allocation7], %s1396_s25  ;;  %p2474_p6 = scmp.eq.s32.totalorder %s1893_s26, 0 }
  0x5e   : > { %1743 = dma.done.wait (%p2474_p6), [#allocation9], 512   ;;  %p2475_p8 = pmov %p2474_p6 }
  0x5f   : > { %v408_v0 = vld [vmem:[#allocation8 + $0x18] sm:$0xff]  ;;  %v407_v1 = vld [vmem:[#allocation8 + $0x10] sm:$0xff]  ;;  %v406_v2 = vld [vmem:[#allocation8 + $0x8] sm:$0xff]  ;;  %vm413_vm0 = vcmask 261120   ;;  %s1400_s30 = sshll.u32 %s1893_s26, 1  ;;  %v1769_v18 = vmov 0  }
  0x60   : > { %1745 = vsyncadd (%p2475_p8), [#allocation9], 4294966784  ;;  %432 = vmatpush.msra.mxu0 %v408_v0  ;;  %v405_v3 = vld [vmem:[#allocation8] sm:$0xff]  ;;  %v484_v5 = vld [vmem:[%s329_s18 + $0x8] sm:$0xff]  ;;  %p394_p3 = scmp.lt.s32.totalorder %s1400_s30, 3  ;;  %v1770_v24 = vmov 0.0  }
  0x61   : > { %v403_v4 = vld [vmem:[%s319_s8] sm:$0xff]  ;;  %v404_v6 = vld [vmem:[%s319_s8 + $0x8] sm:$0xff]  ;;  %vm595_vm6 = vcmask 64512   ;;  %s1771_s12 = smov 96   ;;  %s1772_s21 = smov 120  }
  0x62   : > { %433 = vmatpush.msra.mxu0 %v407_v1  ;;  %v483_v7 = vld [vmem:[%s329_s18] sm:$0xff]  ;;  %v486_v8 = vld [vmem:[%s329_s18 + $0x18] sm:$0xff]  ;;  %v485_v9 = vld [vmem:[%s329_s18 + $0x10] sm:$0xff]  ;;  %s2515_s30 = smov (!%p394_p3, %s1400_s30), 3  ;;  %s1773_s13 = smov 64  }
  0x63   : > { %v1529_v10 = vld [vmem:[%s2446_s5] ss:$0 sm:$0xff]  ;;  %s1445_s1 = sshll.u32 %s2515_s30, 2  ;;  %s1774_s19 = smov 32  }
  0x64   : > { %434 = vmatpush.msra.mxu0 %v406_v2  ;;  %s398_s29 = scalar_lea.vmem %s2444_s3, %s1445_s1  ;;  %s389_s10 = scalar_lea.vmem [#allocation10], %s1395_s28 }
  0x65   : > { %v551_v17 = vld [vmem:[%s398_s29] sm:$0x3]  ;;  %v552_v20 = vld [vmem:[%s398_s29 + $0x2] sm:$0x3]  ;;  %v553_v23 = vld [vmem:[%s398_s29 + $0x4] sm:$0x3] }
  0x66   : > { %435 = vmatpush.msra.mxu0 %v405_v3  ;;  %vm555_vm1 = vnez %v551_v17  ;;  %vm556_vm2 = vnez %v552_v20  ;;  %vm557_vm4 = vnez %v553_v23  ;;  %v554_v32 = vld [vmem:[%s398_s29 + $0x6] sm:$0x3]  ;;  %s1446_s11 = sshll.u32 %s1893_s26, 4  ;;  %s1238_s25 = sshll.u32 %s389_s10, 4  ;;  %s1239_s25 = int_to_ptr.vmem [resolvable:$true] %s1238_s25 }
  0x67   : > { %1403 = vmatmul.msk.f32.vlgmr.msra.gmra.mxu0 %vm413_vm0, %v403_v4  ;;  %v559_v19 = vsel %vm555_vm1, 16843009, %v1769_v18  ;;  %v560_v22 = vsel %vm556_vm2, 16843009, %v1769_v18  ;;  %v561_v29 = vsel %vm557_vm4, 16843009, %v1769_v18  ;;  %vm558_vm7 = vnez %v554_v32  ;;  %s1237_s23 = scalar_lea.hbm %s2447_s6, %s1446_s11 }
  0x68   : > { %1425 = vmatpush.xpose.msk.msrb.mxu0 %vm413_vm0, %v484_v5  ;;  %v563_v21 = vunpack.c.0.s8 %v559_v19  ;;  %v564_v26 = vunpack.c.0.s8 %v560_v22  ;;  %v565_v35 = vunpack.c.0.s8 %v561_v29  ;;  %v562_v40 = vsel %vm558_vm7, 16843009, %v1769_v18  ;;  %s1240_s16 = sshll.u32 %s1237_s23, 4  ;;  %s1226_s18 = scalar_lea.sflag [#allocation4], %s1974_s4  ;;  %s1241_s16 = int_to_ptr.hbm [resolvable:$true] %s1240_s16 }
  0x69   : > { %v566_v44 = vunpack.c.0.s8 %v562_v40  ;;  %s1710_s14 = scalar_lea.hbm %s2447_s6, 32 }
  0x6a   : > { %vm567_vm3 = vcmp.ne.s32.totalorder %v563_v21, 0  ;;  %vm568_vm5 = vcmp.ne.s32.totalorder %v564_v26, 0  ;;  %vm569_vm8 = vcmp.ne.s32.totalorder %v565_v35, 0 }
  0x6b   : > { %v1413_v25 = vsel %vm567_vm3, 1.0, %v1770_v24  ;;  %v1414_v36 = vsel %vm568_vm5, 1.0, %v1770_v24  ;;  %v1415_v42 = vsel %vm569_vm8, 1.0, %v1770_v24  ;;  %vm570_vm9 = vcmp.ne.s32.totalorder %v566_v44, 0 }
  0x6c   : > { %1426 = vmatpush.xpose.msk.msrb.mxu0 %vm413_vm0, %v483_v7  ;;  %v1416_v52 = vsel %vm570_vm9, 1.0, %v1770_v24 }
  0x6f   : > { %1404 = vmatmul.msk.f32.gmra.mxu0 %vm413_vm0, %v404_v6 }
  0x70   : > { %1428 = vmatpush.xpose.msk.msra.mxu0 %vm413_vm0, %v486_v8 }
  0x74   : > { %1429 = vmatpush.xpose.msk.msra.mxu0 %vm413_vm0, %v485_v9 }
  0xe4   : > { %v437_v11 = vpop.f32.mrf.mxu0 }
  0xe5   : > { %v2005_v12 = vadd.f32 %v1529_v10, %v437_v11 }
  0xe7   : > { %v443_v13 = vmul.f32 0.17677669, %v2005_v12 }
  0xe9   : > { %1407 = vmatpush.xpose.msk.msra.mxu1 %vm413_vm0, %v443_v13  ;;  %1427 = vmatmul.msk.f32.vlgmr.msrb.gmra.mxu0 %vm413_vm0, %v443_v13 }
  0xec   : > { %v440_v14 = vpop.f32.mrf.mxu0  ;;  %1408 = vmatmul.msk.f32.vlgmr.msra.gmra.mxu1 %vm413_vm0, %v483_v7 }
  0xed   : > { %v2011_v15 = vadd.f32 %v1529_v10, %v440_v14 }
  0xef   : > { %v444_v16 = vmul.f32 0.17677669, %v2011_v15  ;;  %v1524_v2 = vpack.i.bf16 %v2011_v15, %v2005_v12 }
  0xf1   : > { %1410 = vmatpush.xpose.msk.msra.mxu2 %vm413_vm0, %v444_v16  ;;  %1430 = vmatmul.msk.f32.vlgmr.msra.gmra.mxu0 %vm413_vm0, %v444_v16 }
  0xf4   : > { %1409 = vmatmul.msk.f32.gmra.mxu1 %vm413_vm0, %v484_v5  ;;  %1411 = vmatmul.msk.f32.vlgmr.msra.gmra.mxu2 %vm413_vm0, %v485_v9 }
  0xfc   : > { %1412 = vmatmul.msk.f32.gmra.mxu2 %vm413_vm0, %v486_v8 }
 0x166   : > { %v899_v63 = vpop.f32.mrf.mxu0 }
 0x167   : > { %v2069_v0 = vmax.f32 %v899_v63, 0.0  ;;  %v924_v4 = vsub.f32 0.0, %v899_v63 }
 0x169   : > { %v513_v27 = vpop.f32.mrf.mxu1  ;;  %v2078_v6 = vmax.f32 %v924_v4, 0.0  ;;  %v928_v8 = vsel %vm595_vm6, %v2069_v0, 0.0 }
 0x16a   : > { %v2023_v28 = vmul.f32 %v1413_v25, %v513_v27 }
 0x16b   : > { %v934_v9 = vsel %vm595_vm6, %v2078_v6, 0.0 }
 0x16c   : > { %v583_v30 = vmax.f32 %v2023_v28, 0.0  ;;  %v587_v31 = vsub.f32 0.0, %v2023_v28 }
 0x16e   : > { %v596_v33 = vsel %vm595_vm6, %v583_v30, 0.0  ;;  %v2030_v34 = vmax.f32 %v587_v31, 0.0  ;;  %v919_v1 = vpop.f32.mrf.mxu0 }
 0x16f   : > { %597 = vadd.xlane.f32.xlu0 %v596_v33  ;;  %v925_v3 = vsub.f32 0.0, %v919_v1  ;;  %v2082_v7 = vmax.f32 %v919_v1, 0.0 }
 0x170   : > { %v672_v37 = vsel %vm595_vm6, %v2030_v34, 0.0 }
 0x171   : > { %673 = vadd.xlane.f32.xlu1 %v672_v37  ;;  %v516_v38 = vpop.f32.mrf.mxu1  ;;  %v2076_v5 = vmax.f32 %v925_v3, 0.0  ;;  %v931_v10 = vsel %vm595_vm6, %v2082_v7, 0.0 }
 0x172   : > { %v2034_v39 = vmul.f32 %v1414_v36, %v516_v38 }
 0x174   : > { %v584_v41 = vmax.f32 %v2034_v39, 0.0  ;;  %v588_v49 = vsub.f32 0.0, %v2034_v39 }
 0x176   : > { %v599_v43 = vsel %vm595_vm6, %v584_v41, 0.0  ;;  %v2054_v56 = vmax.f32 %v588_v49, 0.0 }
 0x177   : > { %v545_v45 = vpop.f32.mrf.mxu2  ;;  %600 = vadd.xlane.f32.xlu0 %v599_v43 }
 0x178   : > { %v2040_v46 = vmul.f32 %v1415_v42, %v545_v45  ;;  %v675_v59 = vsel %vm595_vm6, %v2054_v56, 0.0 }
 0x17a   : > { %v585_v47 = vmax.f32 %v2040_v46, 0.0  ;;  %v589_v48 = vsub.f32 0.0, %v2040_v46 }
 0x17c   : > { %v602_v50 = vsel %vm595_vm6, %v585_v47, 0.0  ;;  %v2048_v51 = vmax.f32 %v589_v48, 0.0 }
 0x17d   : > { %603 = vadd.xlane.f32.xlu1 %v602_v50 }
 0x17e   : > { %v678_v53 = vsel %vm595_vm6, %v2048_v51, 0.0 }
 0x17f   : > { %679 = vadd.xlane.f32.xlu2 %v678_v53  ;;  %v548_v54 = vpop.f32.mrf.mxu2 }
 0x180   : > { %v2052_v55 = vmul.f32 %v1416_v52, %v548_v54 }
 0x182   : > { %v586_v57 = vmax.f32 %v2052_v55, 0.0  ;;  %v590_v58 = vsub.f32 0.0, %v2052_v55 }
 0x184   : > { %v605_v60 = vsel %vm595_vm6, %v586_v57, 0.0  ;;  %v2063_v61 = vmax.f32 %v590_v58, 0.0 }
 0x185   : > { %676 = vadd.xlane.f32.xlu1 %v675_v59  ;;  %606 = vadd.xlane.f32.xlu0 %v605_v60 }
 0x186   : > { %v681_v62 = vsel %vm595_vm6, %v2063_v61, 0.0 }
 0x18d   : > { %682 = vadd.xlane.f32.xlu0 %v681_v62 }
 0x197   : > { %753 = vrot.lane.b32.xlu2 %v2005_v12, %s1771_s12 }
 0x19e   : > { %786 = vrot.lane.b32.xlu1 %v2011_v15, %s1771_s12 }
 0x19f   : > { %1010 = vrot.lane.b32.xlu2 %v2069_v0, %s1772_s21 }
 0x1a1   : > { %1525 = vrot.lane.b32.xlu0 %v1524_v2, %s1773_s13 }
 0x1a6   : > { %1026 = vrot.lane.b32.xlu1 %v2076_v5, %s1772_s21 }
 0x1a7   : > { %1024 = vrot.lane.b32.xlu2 %v2078_v6, %s1772_s21 }
 0x1af   : > { %1012 = vrot.lane.b32.xlu2 %v2082_v7, %s1772_s21 }
 0x1cb   : > { %929 = vadd.xlane.f32.xlu0 %v928_v8 }
 0x1d8   : > { %935 = vadd.xlane.f32.xlu2 %v934_v9 }
 0x1e0   : > { %932 = vadd.xlane.f32.xlu2 %v931_v10 }
 0x1e2   : > { %v598_v11 = vpop.xlane.xlu0 %597 }
 0x1e3   : > { %v608_v13 = vadd.f32 1e-09, %v598_v11 }
 0x1e4   : > { %v674_v14 = vpop.xlane.xlu1 %673 }
 0x1e5   : > { %1530 = vrcp.f32 %v608_v13  ;;  %v2091_v20 = vadd.f32 1e-09, %v674_v14  ;;  %vm617_vm10 = vweird.f32 %v608_v13  ;;  %v623_v25 = vand.u32 2147483648, %v608_v13 }
 0x1e6   : > { %v621_v29 = vand.u32 2147483647, %v608_v13 }
 0x1e7   : > { %v624_v36 = vor.u32 1.1754944e-38, %v623_v25  ;;  %vm693_vm3 = vweird.f32 %v2091_v20 }
 0x1e8   : > { %vm622_vm13 = vcmp.eq.f32.partialorder %v621_v29, 8.507059e+37 }
 0x1ea   : > { %v601_v16 = vpop.xlane.xlu0 %600 }
 0x1eb   : > { %v1531_v17 = vpop.eup %1530  ;;  %v609_v18 = vadd.f32 1e-09, %v601_v16 }
 0x1ec   : > { %v613_v19 = vmul.f32 %v1531_v17, %v608_v13  ;;  %vm618_vm11 = vweird.f32 %v1531_v17 }
 0x1ed   : > { %1532 = vrcp.f32 %v609_v18  ;;  %vm619_vm12 = vmor %vm617_vm10, %vm618_vm11  ;;  %vm631_vm14 = vweird.f32 %v609_v18  ;;  %v635_v50 = vand.u32 2147483647, %v609_v18  ;;  %v637_v52 = vand.u32 2147483648, %v609_v18 }
 0x1ee   : > { %v614_v21 = vsub.f32 1.0, %v613_v19  ;;  %1534 = vrcp.f32 %v2091_v20 }
 0x1ef   : > { %v638_v1 = vor.u32 1.1754944e-38, %v637_v52  ;;  %vm636_vm2 = vcmp.eq.f32.partialorder %v635_v50, 8.507059e+37 }
 0x1f0   : > { %v604_v22 = vpop.xlane.xlu1 %603  ;;  %v615_v23 = vmul.f32 %v1531_v17, %v614_v21  ;;  %v699_v21 = vand.u32 2147483648, %v2091_v20 }
 0x1f1   : > { %v2094_v24 = vadd.f32 1e-09, %v604_v22 }
 0x1f2   : > { %v680_v26 = vpop.xlane.xlu2 %679  ;;  %v616_v27 = vadd.f32 %v1531_v17, %v615_v23 }
 0x1f3   : > { %v1533_v31 = vpop.eup %1532  ;;  %1536 = vrcp.f32 %v2094_v24  ;;  %v2097_v32 = vadd.f32 1e-09, %v680_v26  ;;  %v651_v39 = vand.u32 2147483648, %v2094_v24  ;;  %vm645_vm7 = vweird.f32 %v2094_v24 }
 0x1f4   : > { %v627_v33 = vmul.f32 %v1533_v31, %v609_v18  ;;  %v620_v35 = vsel %vm619_vm12, %v1531_v17, %v616_v27  ;;  %v2099_v37 = vpop.eup %1534  ;;  %vm632_vm15 = vweird.f32 %v1533_v31  ;;  %v649_v29 = vand.u32 2147483647, %v2094_v24 }
 0x1f5   : > { %1538 = vrcp.f32 %v2097_v32  ;;  %v625_v40 = vsel %vm622_vm13, %v624_v36, %v620_v35  ;;  %v689_v48 = vmul.f32 %v2099_v37, %v2091_v20  ;;  %vm633_vm1 = vmor %vm631_vm14, %vm632_vm15  ;;  %vm694_vm4 = vweird.f32 %v2099_v37 }
 0x1f6   : > { %v628_v38 = vsub.f32 1.0, %v627_v33  ;;  %v668_v59 = vmul.f32 %v625_v40, %v583_v30  ;;  %vm2151_vm8 = vmor %vm693_vm3, %vm694_vm4  ;;  %v937_v35 = vsel %vm595_vm6, %v2076_v5, 0.0  ;;  %vm650_vm12 = vcmp.eq.f32.partialorder %v649_v29, 8.507059e+37 }
 0x1f7   : > { %v690_v2 = vsub.f32 1.0, %v689_v48  ;;  %vm721_vm13 = vweird.f32 %v2097_v32 }
 0x1f8   : > { %v677_v42 = vpop.xlane.xlu1 %676  ;;  %v607_v43 = vpop.xlane.xlu0 %606  ;;  %v629_v44 = vmul.f32 %v1533_v31, %v628_v38  ;;  %v652_v38 = vor.u32 1.1754944e-38, %v651_v39 }
 0x1f9   : > { %v2102_v45 = vpop.eup %1536  ;;  %v2106_v49 = vadd.f32 1e-09, %v607_v43  ;;  %v2110_v54 = vadd.f32 1e-09, %v677_v42  ;;  %v691_v10 = vmul.f32 %v2099_v37, %v690_v2 }
 0x1fa   : > { %v641_v53 = vmul.f32 %v2102_v45, %v2094_v24  ;;  %v754_v58 = vpop.permute.xlu2 %753  ;;  %v630_v60 = vadd.f32 %v1533_v31, %v629_v44  ;;  %vm646_vm5 = vweird.f32 %v2102_v45  ;;  %v700_v24 = vor.u32 1.1754944e-38, %v699_v21 }
 0x1fb   : > { %777 = vmatpush.msra.mxu3 %v754_v58  ;;  %v2114_v62 = vpop.eup %1538  ;;  %1540 = vrcp.f32 %v2106_v49  ;;  %v692_v25 = vadd.f32 %v2099_v37, %v691_v10  ;;  %vm2159_vm9 = vmor %vm645_vm7, %vm646_vm5  ;;  %v727_v58 = vand.u32 2147483648, %v2097_v32  ;;  %vm707_vm5 = vweird.f32 %v2110_v54 }
 0x1fc   : > { %1417 = vmatmul.msk.f32.vlgmr.msra.gmra.mxu3 %vm595_vm6, %v668_v59  ;;  %v634_v63 = vsel %vm633_vm1, %v1533_v31, %v630_v60  ;;  %v642_v3 = vsub.f32 1.0, %v641_v53  ;;  %1542 = vrcp.f32 %v2110_v54  ;;  %v717_v28 = vmul.f32 %v2114_v62, %v2097_v32 }
 0x1fd   : > { %v639_v30 = vsel %vm636_vm2, %v638_v1, %v634_v63  ;;  %v696_v44 = vsel %vm2151_vm8, %v2099_v37, %v692_v25  ;;  %vm722_vm11 = vweird.f32 %v2114_v62  ;;  %v663_v60 = vand.u32 2147483647, %v2106_v49 }
 0x1fe   : > { %v643_v11 = vmul.f32 %v2102_v45, %v642_v3  ;;  %v669_v14 = vmul.f32 %v639_v30, %v584_v41  ;;  %v718_v16 = vsub.f32 1.0, %v717_v28  ;;  %v697_v41 = vand.u32 2147483647, %v2091_v20  ;;  %vm2186_vm14 = vmor %vm721_vm13, %vm722_vm11 }
 0x1ff   : > { %v665_v63 = vand.u32 2147483648, %v2106_v49  ;;  %vm659_vm2 = vweird.f32 %v2106_v49  ;;  %vm2205_vm4 = vcmp.eq.f32.partialorder %v663_v60, 8.507059e+37 }
 0x200   : > { %v683_v4 = vpop.xlane.xlu0 %682  ;;  %v644_v23 = vadd.f32 %v2102_v45, %v643_v11  ;;  %v719_v26 = vmul.f32 %v2114_v62, %v718_v16  ;;  %vm2163_vm10 = vcmp.eq.f32.partialorder %v697_v41, 8.507059e+37  ;;  %v728_v11 = vor.u32 1.1754944e-38, %v727_v58 }
 0x201   : > { %v2121_v8 = vadd.f32 1e-09, %v683_v4  ;;  %v2123_v9 = vpop.eup %1540  ;;  %v701_v1 = vsel %vm2163_vm10, %v700_v24, %v696_v44  ;;  %v666_v16 = vor.u32 1.1754944e-38, %v665_v63 }
 0x202   : > { %v1011_v13 = vpop.permute.xlu2 %1010  ;;  %v655_v17 = vmul.f32 %v2123_v9, %v2106_v49  ;;  %v2133_v19 = vpop.eup %1542  ;;  %v648_v43 = vsel %vm2159_vm9, %v2102_v45, %v644_v23  ;;  %v720_v53 = vadd.f32 %v2114_v62, %v719_v26  ;;  %v725_v45 = vand.u32 2147483647, %v2097_v32 }
 0x203   : > { %1544 = vrcp.f32 %v2121_v8  ;;  %v1016_v18 = vsel %vm595_vm6, %v1011_v13, 0.0  ;;  %v703_v27 = vmul.f32 %v2133_v19, %v2110_v54  ;;  %v653_v37 = vsel %vm650_vm12, %v652_v38, %v648_v43 }
 0x204   : > { %1017 = vadd.xlane.f32.xlu1 %v1016_v18  ;;  %1418 = vmatmul.msk.f32.gmra.mxu3 %vm595_vm6, %v669_v14  ;;  %v656_v22 = vsub.f32 1.0, %v655_v17  ;;  %vm660_vm15 = vweird.f32 %v2123_v9  ;;  %v724_v32 = vsel %vm2186_vm14, %v2114_v62, %v720_v53  ;;  %v670_v10 = vmul.f32 %v653_v37, %v585_v47 }
 0x205   : > { %v704_v50 = vsub.f32 1.0, %v703_v27  ;;  %vm726_vm1 = vcmp.eq.f32.partialorder %v725_v45, 8.507059e+37  ;;  %v744_v13 = vmul.f32 %v701_v1, %v2030_v34  ;;  %vm2201_vm3 = vmor %vm659_vm2, %vm660_vm15  ;;  %vm708_vm7 = vweird.f32 %v2133_v19 }
 0x206   : > { %v657_v48 = vmul.f32 %v2123_v9, %v656_v22  ;;  %v729_v47 = vsel %vm726_vm1, %v728_v11, %v724_v32  ;;  %v711_v34 = vand.u32 2147483647, %v2110_v54  ;;  %v713_v23 = vand.u32 2147483648, %v2110_v54  ;;  %vm2227_vm9 = vmor %vm707_vm5, %vm708_vm7 }
 0x207   : > { %v705_v28 = vmul.f32 %v2133_v19, %v704_v50  ;;  %v746_v25 = vmul.f32 %v729_v47, %v2048_v51  ;;  %vm735_vm10 = vweird.f32 %v2121_v8  ;;  %v739_v29 = vand.u32 2147483647, %v2121_v8 }
 0x208   : > { %v658_v3 = vadd.f32 %v2123_v9, %v657_v48  ;;  %v714_v36 = vor.u32 1.1754944e-38, %v713_v23  ;;  %vm712_vm12 = vcmp.eq.f32.partialorder %v711_v34, 8.507059e+37  ;;  %v2283_v23 = vld [vmem:[%s1990_s20] sm:$0xff] }
 0x209   : > { %v2155_v33 = vpop.eup %1544  ;;  %v706_v21 = vadd.f32 %v2133_v19, %v705_v28  ;;  %vm740_vm13 = vcmp.eq.f32.partialorder %v739_v29, 8.507059e+37 }
 0x20a   : > { %v731_v20 = vmul.f32 %v2155_v33, %v2121_v8  ;;  %v1025_v42 = vpop.permute.xlu2 %1024  ;;  %v662_v49 = vsel %vm2201_vm3, %v2123_v9, %v658_v3  ;;  %vm736_vm8 = vweird.f32 %v2155_v33  ;;  %v741_v9 = vand.u32 2147483648, %v2121_v8 }
 0x20b   : > { %v1030_v52 = vsel %vm595_vm6, %v1025_v42, 0.0  ;;  %v667_v26 = vsel %vm2205_vm4, %v666_v16, %v662_v49  ;;  %vm2233_vm11 = vmor %vm735_vm10, %vm736_vm8  ;;  %v710_v51 = vsel %vm2227_vm9, %v2133_v19, %v706_v21  ;;  %vm1108_vm8 = vcmask 130048  }
 0x20c   : > { %v732_v59 = vsub.f32 1.0, %v731_v20  ;;  %938 = vadd.xlane.f32.xlu1 %v937_v35  ;;  %1031 = vadd.xlane.f32.xlu0 %v1030_v52  ;;  %v671_v8 = vmul.f32 %v667_v26, %v586_v57  ;;  %v742_v38 = vor.u32 1.1754944e-38, %v741_v9  ;;  %v715_v24 = vsel %vm712_vm12, %v714_v36, %v710_v51 }
 0x20d   : > { %v745_v19 = vmul.f32 %v715_v24, %v2054_v56 }
 0x20e   : > { %v733_v30 = vmul.f32 %v2155_v33, %v732_v59 }
 0x210   : > { %v787_v4 = vpop.permute.xlu1 %786  ;;  %v734_v39 = vadd.f32 %v2155_v33, %v733_v30 }
 0x211   : > { %810 = vmatpush.msrb.mxu3 %v787_v4 }
 0x212   : > { %v1013_v46 = vpop.permute.xlu2 %1012  ;;  %1419 = vmatmul.msk.f32.vlgmr.msrb.gmra.mxu3 %vm595_vm6, %v670_v10  ;;  %v738_v54 = vsel %vm2233_vm11, %v2155_v33, %v734_v39 }
 0x213   : > { %v1526_v17 = vpop.permute.xlu0 %1525  ;;  %v1019_v18 = vsel %vm595_vm6, %v1013_v46, 0.0  ;;  %v743_v20 = vsel %vm740_vm13, %v742_v38, %v738_v54 }
 0x214   : > { %1020 = vadd.xlane.f32.xlu0 %v1019_v18  ;;  %v1527_v41 = vunpack.i.l.bf16 %v1526_v17  ;;  %v1528_v22 = vunpack.i.h.bf16 %v1526_v17  ;;  %v747_v42 = vmul.f32 %v743_v20, %v2063_v61  ;;  %v2277_v17 = vld [vmem:[%s1990_s20 + $0x8] sm:$0xff] }
 0x216   : > { %842 = vmatpush.msrb.mxu1 %v1527_v41  ;;  %874 = vmatpush.msrb.mxu2 %v1528_v22 }
 0x217   : > { %1421 = vmatmul.msk.f32.vlgmr.msrb.gmra.mxu1 %vm595_vm6, %v744_v13  ;;  %1423 = vmatmul.msk.f32.vlgmr.msrb.gmra.mxu2 %vm595_vm6, %v746_v25 }
 0x218   : > { %v1027_v35 = vpop.permute.xlu1 %1026 }
 0x219   : > { %v1033_v40 = vsel %vm595_vm6, %v1027_v35, 0.0 }
 0x21a   : > { %1034 = vadd.xlane.f32.xlu2 %v1033_v40  ;;  %1420 = vmatmul.msk.f32.gmra.mxu3 %vm595_vm6, %v671_v8 }
 0x21f   : > { %1422 = vmatmul.msk.f32.gmra.mxu1 %vm595_vm6, %v745_v19  ;;  %1424 = vmatmul.msk.f32.gmra.mxu2 %vm595_vm6, %v747_v42 }
 0x23e   : > { %v930_v55 = vpop.xlane.xlu0 %929 }
 0x23f   : > { %v940_v57 = vadd.f32 1e-09, %v930_v55 }
 0x241   : > { %v942_v43 = vmul.f32 2.0, %v940_v57 }
 0x243   : > { %1546 = vrcp.f32 %v942_v43  ;;  %vm949_vm15 = vweird.f32 %v942_v43  ;;  %v953_v16 = vand.u32 2147483647, %v942_v43  ;;  %v955_v46 = vand.u32 2147483648, %v942_v43 }
 0x245   : > { %v956_v25 = vor.u32 1.1754944e-38, %v955_v46  ;;  %vm954_vm3 = vcmp.eq.f32.partialorder %v953_v16, 8.507059e+37 }
 0x249   : > { %v1547_v50 = vpop.eup %1546 }
 0x24a   : > { %v945_v53 = vmul.f32 %v1547_v50, %v942_v43  ;;  %vm950_vm14 = vweird.f32 %v1547_v50 }
 0x24b   : > { %v936_v33 = vpop.xlane.xlu2 %935  ;;  %vm2269_vm1 = vmor %vm949_vm15, %vm950_vm14 }
 0x24c   : > { %v974_v48 = vadd.f32 1e-09, %v936_v33  ;;  %v946_v45 = vsub.f32 1.0, %v945_v53 }
 0x24e   : > { %v2253_v58 = vmul.f32 2.0, %v974_v48  ;;  %v947_v60 = vmul.f32 %v1547_v50, %v946_v45 }
 0x250   : > { %1548 = vrcp.f32 %v2253_v58  ;;  %v948_v11 = vadd.f32 %v1547_v50, %v947_v60  ;;  %vm983_vm9 = vweird.f32 %v2253_v58  ;;  %v989_v53 = vand.u32 2147483648, %v2253_v58 }
 0x252   : > { %v952_v21 = vsel %vm2269_vm1, %v1547_v50, %v948_v11  ;;  %v990_v11 = vor.u32 1.1754944e-38, %v989_v53 }
 0x253   : > { %v933_v44 = vpop.xlane.xlu2 %932  ;;  %v957_v8 = vsel %vm954_vm3, %v956_v25, %v952_v21 }
 0x254   : > { %v941_v52 = vadd.f32 1e-09, %v933_v44  ;;  %v972_v33 = vmul.f32 %v957_v8, %v2069_v0 }
 0x256   : > { %v2255_v59 = vmul.f32 2.0, %v941_v52  ;;  %v2259_v2 = vpop.eup %1548 }
 0x257   : > { %v979_v13 = vmul.f32 %v2259_v2, %v2253_v58  ;;  %vm984_vm10 = vweird.f32 %v2259_v2 }
 0x258   : > { %1550 = vrcp.f32 %v2255_v59  ;;  %vm2315_vm12 = vmor %vm983_vm9, %vm984_vm10  ;;  %vm963_vm13 = vweird.f32 %v2255_v59 }
 0x259   : > { %v980_v39 = vsub.f32 1.0, %v979_v13 }
 0x25b   : > { %v981_v38 = vmul.f32 %v2259_v2, %v980_v39 }
 0x25d   : > { %v982_v52 = vadd.f32 %v2259_v2, %v981_v38  ;;  %v751_v38 = vld [vmem:[%s1990_s20 + $0x18] sm:$0xff] }
 0x25e   : > { %v2261_v28 = vpop.eup %1550 }
 0x25f   : > { %v959_v49 = vmul.f32 %v2261_v28, %v2255_v59  ;;  %vm964_vm11 = vweird.f32 %v2261_v28 }
 0x260   : > { %vm2330_vm15 = vmor %vm963_vm13, %vm964_vm11 }
 0x261   : > { %v960_v29 = vsub.f32 1.0, %v959_v49 }
 0x263   : > { %v961_v55 = vmul.f32 %v2261_v28, %v960_v29 }
 0x265   : > { %v962_v60 = vadd.f32 %v2261_v28, %v961_v55 }
 0x267   : > { %v966_v49 = vsel %vm2330_vm15, %v2261_v28, %v962_v60 }
 0x277   : > { %v1018_v56 = vpop.xlane.xlu1 %1017 }
 0x278   : > { %v1036_v61 = vadd.f32 1e-09, %v1018_v56 }
 0x27a   : > { %v1038_v37 = vmul.f32 2.0, %v1036_v61 }
 0x27c   : > { %1552 = vrcp.f32 %v1038_v37  ;;  %v1051_v18 = vand.u32 2147483648, %v1038_v37  ;;  %v1049_v22 = vand.u32 2147483647, %v1038_v37  ;;  %vm1045_vm4 = vweird.f32 %v1038_v37 }
 0x27e   : > { %v1052_v54 = vor.u32 1.1754944e-38, %v1051_v18  ;;  %vm1050_vm7 = vcmp.eq.f32.partialorder %v1049_v22, 8.507059e+37 }
 0x27f   : > { %v779_v63 = vpop.f32.mrf.mxu3  ;;  %v939_v1 = vpop.xlane.xlu1 %938 }
 0x280   : > { %v975_v3 = vadd.f32 1e-09, %v939_v1  ;;  %v1032_v32 = vpop.xlane.xlu0 %1031  ;;  %v780_v35 = vadd.f32 %v779_v63, %v2283_v23  ;;  %v967_v1 = vand.u32 2147483647, %v2255_v59 }
 0x281   : > { %v1070_v30 = vadd.f32 1e-09, %v1032_v32 }
 0x282   : > { %v1553_v4 = vpop.eup %1552  ;;  %v2263_v10 = vmul.f32 2.0, %v975_v3 }
 0x283   : > { %v1041_v14 = vmul.f32 %v1553_v4, %v1038_v37  ;;  %v2267_v62 = vmul.f32 2.0, %v1070_v30  ;;  %vm1046_vm2 = vweird.f32 %v1553_v4  ;;  %v969_v37 = vand.u32 2147483648, %v2255_v59 }
 0x284   : > { %vm1047_vm5 = vmor %vm1045_vm4, %vm1046_vm2  ;;  %v986_v30 = vsel %vm2315_vm12, %v2259_v2, %v982_v52  ;;  %vm968_vm4 = vcmp.eq.f32.partialorder %v967_v1, 8.507059e+37  ;;  %vm997_vm9 = vweird.f32 %v2263_v10 }
 0x285   : > { %v1042_v34 = vsub.f32 1.0, %v1041_v14  ;;  %1554 = vrcp.f32 %v2267_v62  ;;  %v1085_v32 = vand.u32 2147483648, %v2267_v62  ;;  %vm1079_vm1 = vweird.f32 %v2267_v62 }
 0x286   : > { %1556 = vrcp.f32 %v2263_v10  ;;  %v1083_v59 = vand.u32 2147483647, %v2267_v62  ;;  %v970_v46 = vor.u32 1.1754944e-38, %v969_v37 }
 0x287   : > { %v1043_v41 = vmul.f32 %v1553_v4, %v1042_v34  ;;  %v782_v9 = vpop.f32.mrf.mxu3  ;;  %v1086_v39 = vor.u32 1.1754944e-38, %v1085_v32 }
 0x288   : > { %v783_v26 = vadd.f32 %v782_v9, %v2277_v17  ;;  %v1021_v27 = vpop.xlane.xlu0 %1020  ;;  %v971_v28 = vsel %vm968_vm4, %v970_v46, %v966_v49  ;;  %v1405_v49 = vmul.f32 -1.442695, %v2005_v12 }
 0x289   : > { %v1037_v31 = vadd.f32 1e-09, %v1021_v27  ;;  %v1044_v51 = vadd.f32 %v1553_v4, %v1043_v41  ;;  %v973_v1 = vmul.f32 %v971_v28, %v2082_v7 }
 0x28a   : > { %1126 = vmatpush.msra.mxu3 %v783_v26  ;;  %v1001_v26 = vand.u32 2147483647, %v2263_v10 }
 0x28b   : > { %v2287_v36 = vpop.eup %1554  ;;  %v2290_v40 = vmul.f32 2.0, %v1037_v31  ;;  %v1048_v24 = vsel %vm1047_vm5, %v1553_v4, %v1044_v51  ;;  %v1003_v31 = vand.u32 2147483648, %v2263_v10 }
 0x28c   : > { %v2292_v20 = vpop.eup %1556  ;;  %v1075_v19 = vmul.f32 %v2287_v36, %v2267_v62  ;;  %1127 = vmatpush.msra.mxu3 %v780_v35  ;;  %v1053_v42 = vsel %vm1050_vm7, %v1052_v54, %v1048_v24  ;;  %vm1080_vm14 = vweird.f32 %v2287_v36  ;;  %vm1084_vm7 = vcmp.eq.f32.partialorder %v1083_v59, 8.507059e+37 }
 0x28d   : > { %1558 = vrcp.f32 %v2290_v40  ;;  %v1035_v57 = vpop.xlane.xlu2 %1034  ;;  %v1068_v48 = vmul.f32 %v1053_v42, %v2069_v0  ;;  %v993_v50 = vmul.f32 %v2292_v20, %v2263_v10  ;;  %v987_v0 = vand.u32 2147483647, %v2253_v58  ;;  %vm2337_vm2 = vmor %vm1079_vm1, %vm1080_vm14 }
 0x28e   : > { %v1076_v43 = vsub.f32 1.0, %v1075_v19  ;;  %v1071_v44 = vadd.f32 1e-09, %v1035_v57  ;;  %v1063_v41 = vand.u32 2147483647, %v2290_v40  ;;  %v1065_v22 = vand.u32 2147483648, %v2290_v40 }
 0x28f   : > { %v1104_v45 = vsel %vm595_vm6, %v972_v33, %v1068_v48  ;;  %v994_v3 = vsub.f32 1.0, %v993_v50  ;;  %vm988_vm3 = vcmp.eq.f32.partialorder %v987_v0, 8.507059e+37  ;;  %vm998_vm10 = vweird.f32 %v2292_v20 }
 0x290   : > { %v1077_v56 = vmul.f32 %v2287_v36, %v1076_v43  ;;  %v2307_v61 = vmul.f32 2.0, %v1071_v44  ;;  %1431 = vmatmul.msk.f32.vlgmr.msra.gmra.mxu3 %vm1108_vm8, %v1104_v45  ;;  %v991_v18 = vsel %vm988_vm3, %v990_v11, %v986_v30  ;;  %vm1059_vm11 = vweird.f32 %v2290_v40  ;;  %v750_v43 = vld [vmem:[%s1990_s20 + $0x10] sm:$0xff]  ;;  %vm2373_vm15 = vmor %vm997_vm9, %vm998_vm10  ;;  %s1704_s20 = sshra.s32 %s1241_s16, 4  ;;  %s1705_s20 = int_to_ptr.hbm [resolvable:$true] %s1704_s20 }
 0x291   : > { %v995_v21 = vmul.f32 %v2292_v20, %v994_v3  ;;  %v1066_v8 = vor.u32 1.1754944e-38, %v1065_v22  ;;  %vm1064_vm13 = vcmp.eq.f32.partialorder %v1063_v41, 8.507059e+37  ;;  %v1004_v10 = vor.u32 1.1754944e-38, %v1003_v31  ;;  %s1706_s28 = scalar_lea.hbm %s1705_s20, 16  ;;  %p1711_p5 = scmp.lt.s32.totalorder %s1705_s20, %s2447_s6 }
 0x292   : > { %1560 = vrcp.f32 %v2307_v61  ;;  %v1078_v4 = vadd.f32 %v2287_v36, %v1077_v56  ;;  %v1097_v19 = vand.u32 2147483647, %v2307_v61  ;;  %v1099_v42 = vand.u32 2147483648, %v2307_v61  ;;  %p1707_p9 = scmp.ne.s32.totalorder %s1705_s20, %s1706_s28  ;;  %p1712_p7 = scmp.lt.s32.totalorder %s1710_s14, %s1706_s28 }
 0x293   : > { %v1559_v58 = vpop.eup %1558  ;;  %v996_v24 = vadd.f32 %v2292_v20, %v995_v21  ;;  %v1006_v56 = vmul.f32 %v991_v18, %v2078_v6  ;;  %vm1093_vm1 = vweird.f32 %v2307_v61  ;;  %vm1002_vm3 = vcmp.eq.f32.partialorder %v1001_v26, 8.507059e+37 }
 0x294   : > { %v1055_v14 = vmul.f32 %v1559_v58, %v2290_v40  ;;  %v844_v16 = vpop.f32.mrf.mxu1  ;;  %v1082_v62 = vsel %vm2337_vm2, %v2287_v36, %v1078_v4  ;;  %vm1060_vm5 = vweird.f32 %v1559_v58  ;;  %v1100_v63 = vor.u32 1.1754944e-38, %v1099_v42  ;;  %p1708_p1 = pnand %p1707_p9, %p1910_p11  ;;  %p1713_p4 = por %p1712_p7, %p1711_p5 }
 0x295   : > { %v812_v2 = vpop.f32.mrf.mxu3  ;;  %v1087_v29 = vsel %vm1084_vm7, %v1086_v39, %v1082_v62  ;;  %vm2356_vm12 = vmor %vm1059_vm11, %vm1060_vm5  ;;  %v845_v0 = vadd.f32 %v844_v16, %v2283_v23  ;;  %vm1098_vm4 = vcmp.eq.f32.partialorder %v1097_v19, 8.507059e+37  ;;  %1562 = vpow2.f32 %v1405_v49 }
 0x296   : > { %v1056_v34 = vsub.f32 1.0, %v1055_v14  ;;  %v1102_v40 = vmul.f32 %v1087_v29, %v2078_v6  ;;  %v813_v6 = vadd.f32 %v812_v2, %v750_v43  ;;  %p1709_p2 = pneg %p1708_p1 }
 0x298   : > { %v1561_v9 = vpop.eup %1560  ;;  %v1057_v25 = vmul.f32 %v1559_v58, %v1056_v34  ;;  %v1106_v23 = vsel %vm595_vm6, %v1006_v56, %v1102_v40  ;;  %v1406_v34 = vmul.f32 -1.442695, %v2011_v15  ;;  %p1714_p10 = pnand %p1713_p4, %p1709_p2 }
 0x299   : > { %v1089_v27 = vmul.f32 %v1561_v9, %v2307_v61  ;;  %vm1094_vm14 = vweird.f32 %v1561_v9 }
 0x29a   : > { %v876_v51 = vpop.f32.mrf.mxu2  ;;  %v1058_v54 = vadd.f32 %v1559_v58, %v1057_v25  ;;  %vm2385_vm2 = vmor %vm1093_vm1, %vm1094_vm14  ;;  %1564 = vpow2.f32 %v1406_v34 }
 0x29b   : > { %v1090_v36 = vsub.f32 1.0, %v1089_v27  ;;  %v877_v4 = vadd.f32 %v876_v51, %v750_v43 }
 0x29c   : > { %v847_v55 = vpop.f32.mrf.mxu1  ;;  %v1062_v57 = vsel %vm2356_vm12, %v1559_v58, %v1058_v54 }
 0x29d   : > { %v1091_v33 = vmul.f32 %v1561_v9, %v1090_v36  ;;  %v848_v44 = vadd.f32 %v847_v55, %v2277_v17  ;;  %v815_v48 = vpop.f32.mrf.mxu3  ;;  %v1067_v50 = vsel %vm1064_vm13, %v1066_v8, %v1062_v57  ;;  %v1000_v17 = vsel %vm2373_vm15, %v2292_v20, %v996_v24 }
 0x29e   : > { %v816_v53 = vadd.f32 %v815_v48, %v751_v38  ;;  %v1069_v45 = vmul.f32 %v1067_v50, %v2082_v7  ;;  %v1005_v3 = vsel %vm1002_vm3, %v1004_v10, %v1000_v17 }
 0x29f   : > { %1172 = vmatpush.msra.mxu2 %v848_v44  ;;  %v1092_v37 = vadd.f32 %v1561_v9, %v1091_v33  ;;  %v1007_v11 = vmul.f32 %v1005_v3, %v2076_v5 }
 0x2a0   : > { %1149 = vmatpush.msra.mxu1 %v816_v53  ;;  %v1105_v58 = vsel %vm595_vm6, %v973_v1, %v1069_v45 }
 0x2a1   : > { %1173 = vmatpush.msra.mxu2 %v845_v0  ;;  %v1096_v61 = vsel %vm2385_vm2, %v1561_v9, %v1092_v37 }
 0x2a2   : > { %v879_v20 = vpop.f32.mrf.mxu2  ;;  %1150 = vmatpush.msra.mxu1 %v813_v6  ;;  %1433 = vmatmul.msk.f32.vlgmr.msra.gmra.mxu2 %vm1108_vm8, %v1106_v23  ;;  %v1101_v32 = vsel %vm1098_vm4, %v1100_v63, %v1096_v61 }
 0x2a3   : > { %v880_v30 = vadd.f32 %v879_v20, %v751_v38  ;;  %1432 = vmatmul.msk.f32.vlgmr.msra.gmra.mxu1 %vm1108_vm8, %v1105_v58  ;;  %v1103_v7 = vmul.f32 %v1101_v32, %v2076_v5  ;;  %v1563_v5 = vpop.eup %1562 }
 0x2a4   : > { %v1565_v18 = vpop.eup %1564  ;;  %v451_v62 = vadd.f32 1.0, %v1563_v5 }
 0x2a5   : > { %1195 = vmatpush.msrb.mxu0 %v880_v30  ;;  %v1107_v13 = vsel %vm595_vm6, %v1007_v11, %v1103_v7  ;;  %v452_v21 = vadd.f32 1.0, %v1565_v18 }
 0x2a6   : > { %1566 = vrcp.f32 %v451_v62  ;;  %vm458_vm5 = vweird.f32 %v451_v62  ;;  %v464_v31 = vand.u32 2147483648, %v451_v62  ;;  %v462_v54 = vand.u32 2147483647, %v451_v62 }
 0x2a7   : > { %1196 = vmatpush.msrb.mxu0 %v877_v4  ;;  %1568 = vrcp.f32 %v452_v21  ;;  %v479_v29 = vand.u32 2147483648, %v452_v21  ;;  %vm473_vm7 = vweird.f32 %v452_v21  ;;  %v477_v51 = vand.u32 2147483647, %v452_v21 }
 0x2a8   : > { %1434 = vmatmul.msk.f32.vlgmr.msrb.gmra.mxu0 %vm1108_vm8, %v1107_v13  ;;  %v465_v38 = vor.u32 1.1754944e-38, %v464_v31  ;;  %vm463_vm12 = vcmp.eq.f32.partialorder %v462_v54, 8.507059e+37 }
 0x2a9   : > { %v480_v36 = vor.u32 1.1754944e-38, %v479_v29  ;;  %vm478_vm11 = vcmp.eq.f32.partialorder %v477_v51, 8.507059e+37 }
 0x2ac   : > { %v1567_v39 = vpop.eup %1566 }
 0x2ad   : > { %v1569_v41 = vpop.eup %1568  ;;  %v454_v9 = vmul.f32 %v1567_v39, %v451_v62  ;;  %vm459_vm6 = vweird.f32 %v1567_v39 }
 0x2ae   : > { %v469_v22 = vmul.f32 %v1569_v41, %v452_v21  ;;  %vm474_vm8 = vweird.f32 %v1569_v41  ;;  %vm460_vm9 = vmor %vm458_vm5, %vm459_vm6 }
 0x2af   : > { %v455_v28 = vsub.f32 1.0, %v454_v9  ;;  %vm475_vm10 = vmor %vm473_vm7, %vm474_vm8 }
 0x2b0   : > { %v470_v25 = vsub.f32 1.0, %v469_v22 }
 0x2b1   : > { %v456_v27 = vmul.f32 %v1567_v39, %v455_v28 }
 0x2b2   : > { %v471_v26 = vmul.f32 %v1569_v41, %v470_v25 }
 0x2b3   : > { %v457_v15 = vadd.f32 %v1567_v39, %v456_v27 }
 0x2b4   : > { %v472_v12 = vadd.f32 %v1569_v41, %v471_v26 }
 0x2b5   : > { %v461_v8 = vsel %vm460_vm9, %v1567_v39, %v457_v15 }
 0x2b6   : > { %v476_v35 = vsel %vm475_vm10, %v1569_v41, %v472_v12  ;;  %v466_v42 = vsel %vm463_vm12, %v465_v38, %v461_v8 }
 0x2b7   : > { %v481_v24 = vsel %vm478_vm11, %v480_v36, %v476_v35 }
 0x313   : > { %v1129_v59 = vpop.f32.mrf.mxu3 }
 0x320   : > { %v1152_v14 = vpop.f32.mrf.mxu1 }
 0x325   : > { %v1175_v16 = vpop.f32.mrf.mxu2  ;;  %v1198_v46 = vpop.f32.mrf.mxu0 }
 0x326   : > { %v1201_v47 = vsub.f32 %v1129_v59, %v1175_v16  ;;  %v1202_v2 = vsub.f32 %v1152_v14, %v1198_v46 }
 0x328   : > { %1207 = vrot.lane.b32.xlu0 %v1202_v2, %s1771_s12  ;;  %1205 = vrot.lane.b32.xlu1 %v1201_v47, %s1771_s12 }
 0x39a   : > { %v1208_v19 = vpop.permute.xlu0 %1207  ;;  %v1206_v55 = vpop.permute.xlu1 %1205 }
 0x39b   : > { %v1212_v40 = vmul.f32 %v1208_v19, %v481_v24  ;;  %v1211_v57 = vmul.f32 %v1206_v55, %v466_v42 }
 0x39d   : > { %1217 = vrot.lane.b32.xlu0 %v1212_v40, %s1774_s19  ;;  %1215 = vrot.lane.b32.xlu2 %v1211_v57, %s1774_s19 }
 0x3f7   : > { %v1216_v33 = vpop.permute.xlu2 %1215 }
 0x3f8   : > { %v1221_v43 = vadd.f32 %v1216_v33, %v1175_v16 }
 0x3fa   : > { %1223 = vst.msk [vmem:[%s389_s10] sm:$0xff] %vm413_vm0, %v1221_v43 }
 0x40f   : > { %v1218_v44 = vpop.permute.xlu0 %1217 }
 0x410   : > { %v1222_v48 = vadd.f32 %v1218_v44, %v1198_v46 }
 0x412   : > { %1224 = vst.msk [vmem:[%s389_s10 + $0x8] sm:$0xff] %vm413_vm0, %v1222_v48 }
 0x413   : > { %1717 = shalt.err (!%p1714_p10)
}
 0x414   : > { %s1775_s4 = smov 128   ;;  %s1776_s27 = smov 8  }
 0x415   : > { %1457 = dma.vmem_to_hbm [thread:$0]  (%p1910_p11), %s1239_s25, 256, %s1241_s16, %s1226_s18, %s1775_s4, %s1775_s4, %s1776_s27  }
 0x416 PF: > { %s2506_s15 = sld [smem:[#allocation15_spill]]  ;;  %p2508_p13 = scmp.ge.s32.totalorder %s1764_s24, 2 }
 0x418   : > { %p1474_p0 = pnand %p2508_p13, %p1914_p12 }
 0x41a   : > { %p1475_p6 = pneg %p1474_p0 }
 0x41c   : > { %s1255_s12 = sand.u32 1, %s2506_s15  }
 0x41d   : > { %s1256_s21 = scalar_lea.sflag [#allocation4], %s1255_s12 }
 0x41e   : > { %1747 = dma.done.wait (%p1475_p6), %s1256_s21, 256  }
 0x41f   : > { %1749 = vsyncadd (%p1475_p6), %s1256_s21, 4294967040  ;;  %s2509_s24 = sld [smem:[#allocation17_spill]]  ;;  %s2512_s21 = smov %s1756_s22 }
 0x420   : > { %s2510_s13 = sld [smem:[#allocation16_spill]] }
 0x421   : > { %s2511_s23 = sld [smem:[#allocation18_spill]] }
 0x425   : > { %p23_p8 = scmp.ge.s32.totalorder %s2509_s24, 4  }
 0x426   : > { %s2513_s22 = smov %s2510_s13 }
 0x427   :  { %25 = sbr.rel (!%p23_p8) target bundleno = 11 (0xb), region = 120 }
 0x42c   :  { %1262 = vsyncpa [#allocation3], 1 }
 0x42d   :  { %1264 = vsyncpa [#allocation3 + $0x1], 1 }
 0x42e   :  { %1265 = vsyncpa [#allocation6], 1 }
 0x42f   :  { %1267 = vsyncpa [#allocation6 + $0x1], 1 }
 0x430   :  { %1268 = vsyncpa [#allocation9], 1 }
 0x431   :  { %1269 = vsyncpa [#allocation4], 1 }
 0x432   :  { %1271 = vsyncpa [#allocation4 + $0x1], 1 }

</bundles_post_ra>
